<compile_context>
chip_gen: v6e
topology: v6e:2x2x1
jax: 0.10.0
libtpu: 0.0.40
codegen_flags: <defaults>
</compile_context>

<pallas_src>
import functools

import jax
import jax.numpy as jnp
from jax.experimental import pallas as pl
from jax.experimental.pallas import tpu as pltpu


def _round_up(x, m):
    return (x + m - 1) // m * m


def _mlp_kernel(x_ref, w1_ref, b1_ref, w2_ref, b2_ref, o_ref, *, n_feature):
    x = x_ref[...]                                   # (TN, F) f32, F tiny (2)
    # ---- Layer 1: x @ W1 + b1 with tiny K (= n_feature) on the VPU --------
    # Broadcast-FMAs beat an MXU matmul for a 2-deep contraction.
    h = x[:, 0:1] * w1_ref[0:1, :]                   # (TN,1)*(1,H_pad)->(TN,H_pad)
    for k in range(1, n_feature):                    # static unroll (n_feature=2)
        h = h + x[:, k:k + 1] * w1_ref[k:k + 1, :]
    h = jnp.maximum(h + b1_ref[...], 0.0)            # bias + F.relu (VPU, f32)
    # ---- Layer 2: h @ W2 + b2 on the MXU, f32 accumulation ----------------
    out = jnp.dot(h, w2_ref[...], preferred_element_type=jnp.float32)
    o_ref[...] = (out + b2_ref[...]).astype(o_ref.dtype)   # (TN, O) store


def prepare_params(w1_t, b1, w2_t, b2):
    """One-time parameter prep (hoisted out of the per-call forward).

    Pads only the hidden dim to a lane-multiple of 128 so the intermediate
    activation and the MXU contraction are lane-dense; zero weight + zero
    bias for the padded hidden units keeps the math exact (ReLU(0)=0).
    """
    f, h_dim = w1_t.shape
    o_dim = w2_t.shape[1]
    h_pad = _round_up(h_dim, 128)
    w1_p = jnp.pad(w1_t, ((0, 0), (0, h_pad - h_dim)))        # (F, H_pad)
    b1_p = jnp.pad(b1, (0, h_pad - h_dim)).reshape(1, h_pad)  # (1, H_pad)
    w2_p = jnp.pad(w2_t, ((0, h_pad - h_dim), (0, 0)))        # (H_pad, O)
    b2_p = b2.reshape(1, o_dim)                               # (1, O)
    return w1_p, b1_p, w2_p, b2_p


def _pick_tile_n(n_pad8):
    # Largest power-of-two tile (<= 512) that divides the 8-rounded batch
    # while keeping grid >= 2 (both v7x TensorCores get work); fall back to 8.
    for cand in (512, 256, 128, 64, 32, 16):
        if n_pad8 % cand == 0 and n_pad8 // cand >= 2:
            return cand
    return 8


def net_forward(x, w1_p, b1_p, w2_p, b2_p):
    """Forward pass of Net.

    x    : (N, F)     float32 (F = n_feature, unpadded)
    w1_p : (F, H_pad) hidden weight, (in, out), hidden padded to 128
    b1_p : (1, H_pad)
    w2_p : (H_pad, O) output weight, (in, out)
    b2_p : (1, O)
    returns (N, O) float32
    """
    n, f = x.shape
    h_pad = w1_p.shape[1]
    o_dim = w2_p.shape[1]

    n_pad8 = _round_up(n, 8)
    tile_n = _pick_tile_n(n_pad8)
    n_pad = _round_up(n, tile_n)

    # Only the batch (sublane) dim is padded, and only when needed.
    x_p = x if n_pad == n else jnp.pad(x, ((0, n_pad - n), (0, 0)))

    grid = (n_pad // tile_n,)
    flops = 2 * n_pad * (f * h_pad + h_pad * o_dim)
    bytes_accessed = 4 * (n_pad * f + f * h_pad + h_pad
                          + h_pad * o_dim + o_dim + n_pad * o_dim)

    out_p = pl.pallas_call(
        functools.partial(_mlp_kernel, n_feature=f),
        out_shape=jax.ShapeDtypeStruct((n_pad, o_dim), x.dtype),
        grid=grid,
        in_specs=[
            # x rows of this tile; last dim = full array dim (2) -> legal, unpadded.
            pl.BlockSpec((tile_n, f), lambda i: (i, 0)),
            pl.BlockSpec((f, h_pad), lambda i: (0, 0)),      # W1 (VMEM-resident)
            pl.BlockSpec((1, h_pad), lambda i: (0, 0)),      # b1
            pl.BlockSpec((h_pad, o_dim), lambda i: (0, 0)),  # W2 (VMEM-resident)
            pl.BlockSpec((1, o_dim), lambda i: (0, 0)),      # b2
        ],
        out_specs=pl.BlockSpec((tile_n, o_dim), lambda i: (i, 0)),
        compiler_params=pltpu.CompilerParams(
            dimension_semantics=("parallel",)),              # megacore batch split
        cost_estimate=pl.CostEstimate(flops=flops, transcendentals=0,
                                      bytes_accessed=bytes_accessed),
    )(x_p, w1_p, b1_p, w2_p, b2_p)

    return out_p if n_pad == n else out_p[:n]


def init_linear(key, in_features, out_features):
    """Deterministic init matching torch.nn.Linear default U(-1/sqrt(in), 1/sqrt(in))."""
    kw, kb = jax.random.split(key)
    bound = 1.0 / jnp.sqrt(float(in_features))
    # torch stores weight as (out, in); we keep the transposed (in, out) form.
    w_t = jax.random.uniform(kw, (in_features, out_features),
                             dtype=jnp.float32, minval=-bound, maxval=bound)
    b = jax.random.uniform(kb, (out_features,),
                           dtype=jnp.float32, minval=-bound, maxval=bound)
    return w_t, b


if __name__ == "__main__":
    key = jax.random.PRNGKey(0)
    k_x0, k_x1, k_l1, k_l2 = jax.random.split(key, 4)

    # Mirror the data construction of the script at small scale:
    # two Gaussian clusters centered at +2 and -2, 2 features each.
    n_per_cluster, n_feature, n_hidden, n_output = 8, 2, 32, 2
    x0 = 2.0 + jax.random.normal(k_x0, (n_per_cluster, n_feature), jnp.float32)
    x1 = -2.0 + jax.random.normal(k_x1, (n_per_cluster, n_feature), jnp.float32)
    x = jnp.concatenate([x0, x1], axis=0)  # (16, 2) float32

    # Net(n_feature=2, n_hidden=32, n_output=2)
    w1_t, b1 = init_linear(k_l1, n_feature, n_hidden)
    w2_t, b2 = init_linear(k_l2, n_hidden, n_output)

    # One-time parameter prep (padding hoisted out of the forward call).
    params = prepare_params(w1_t, b1, w2_t, b2)

    fwd = jax.jit(net_forward)
    out = fwd(x, *params)
    jax.block_until_ready(out)

    # Reference check in plain JAX (same math, no Pallas).
    ref = jnp.maximum(x @ w1_t + b1, 0.0) @ w2_t + b2
    assert out.shape == (2 * n_per_cluster, n_output)
    assert jnp.allclose(out, ref, atol=1e-5, rtol=1e-5), \
        float(jnp.max(jnp.abs(out - ref)))

    print("KERNEL_OK")
</pallas_src>

<mosaic_0001>
module attributes {stable_mosaic.version = 11 : i64} {
  func.func @_mlp_kernel(%arg0: i32, %arg1: memref<8x2xf32, #tpu.memory_space<vmem>>, %arg2: memref<2x128xf32, #tpu.memory_space<vmem>>, %arg3: memref<1x128xf32, #tpu.memory_space<vmem>>, %arg4: memref<128x2xf32, #tpu.memory_space<vmem>>, %arg5: memref<1x2xf32, #tpu.memory_space<vmem>>, %arg6: memref<8x2xf32, #tpu.memory_space<vmem>>) attributes {dimension_semantics = [#tpu.dimension_semantics<parallel>], iteration_bounds = array<i64: 2>, scalar_prefetch = 0 : i64, scratch_operands = 0 : i64, tpu.core_type = #tpu.core_type<tc>, window_params = [{transform_indices = @transform_0, window_bounds = array<i64: 8, 2>}, {pipeline_mode = #tpu.pipeline_mode<synchronous>, transform_indices = @transform_1, window_bounds = array<i64: 2, 128>}, {pipeline_mode = #tpu.pipeline_mode<synchronous>, transform_indices = @transform_2, window_bounds = array<i64: 1, 128>}, {pipeline_mode = #tpu.pipeline_mode<synchronous>, transform_indices = @transform_3, window_bounds = array<i64: 128, 2>}, {pipeline_mode = #tpu.pipeline_mode<synchronous>, transform_indices = @transform_4, window_bounds = array<i64: 1, 2>}, {transform_indices = @transform_5, window_bounds = array<i64: 8, 2>}]} {
    %c0 = arith.constant 0 : index
    %c0_0 = arith.constant 0 : index
    %0 = vector.load %arg1[%c0, %c0_0] : memref<8x2xf32, #tpu.memory_space<vmem>>, vector<8x2xf32>
    %1 = vector.extract_strided_slice %0 {offsets = [0, 0], sizes = [8, 1], strides = [1, 1]} : vector<8x2xf32> to vector<8x1xf32>
    %c0_1 = arith.constant 0 : index
    %c0_2 = arith.constant 0 : index
    %2 = vector.load %arg2[%c0_1, %c0_2] : memref<2x128xf32, #tpu.memory_space<vmem>>, vector<1x128xf32>
    %3 = vector.broadcast %1 : vector<8x1xf32> to vector<8x128xf32>
    %4 = vector.broadcast %2 : vector<1x128xf32> to vector<8x128xf32>
    %5 = arith.mulf %3, %4 : vector<8x128xf32>
    %6 = vector.extract_strided_slice %0 {offsets = [0, 1], sizes = [8, 1], strides = [1, 1]} : vector<8x2xf32> to vector<8x1xf32>
    %c1 = arith.constant 1 : index
    %c0_3 = arith.constant 0 : index
    %7 = vector.load %arg2[%c1, %c0_3] : memref<2x128xf32, #tpu.memory_space<vmem>>, vector<1x128xf32>
    %8 = vector.broadcast %6 : vector<8x1xf32> to vector<8x128xf32>
    %9 = vector.broadcast %7 : vector<1x128xf32> to vector<8x128xf32>
    %10 = arith.mulf %8, %9 : vector<8x128xf32>
    %11 = arith.addf %5, %10 : vector<8x128xf32>
    %c0_4 = arith.constant 0 : index
    %c0_5 = arith.constant 0 : index
    %12 = vector.load %arg3[%c0_4, %c0_5] : memref<1x128xf32, #tpu.memory_space<vmem>>, vector<1x128xf32>
    %13 = vector.broadcast %12 : vector<1x128xf32> to vector<8x128xf32>
    %14 = arith.addf %11, %13 : vector<8x128xf32>
    %cst = arith.constant 0.000000e+00 : f32
    %15 = vector.broadcast %cst : f32 to vector<8x128xf32>
    %16 = arith.maximumf %14, %15 : vector<8x128xf32>
    %c0_6 = arith.constant 0 : index
    %c0_7 = arith.constant 0 : index
    %17 = vector.load %arg4[%c0_6, %c0_7] : memref<128x2xf32, #tpu.memory_space<vmem>>, vector<128x2xf32>
    %cst_8 = arith.constant dense<0.000000e+00> : vector<8x2xf32>
    %18 = tpu.matmul %16, %17, %cst_8 {dimension_numbers = #tpu.dot_dimension_numbers<[1], [0], [0], [1], [0, 0, 1, 1], [], []>} : vector<8x128xf32>, vector<128x2xf32>, vector<8x2xf32> -> vector<8x2xf32>
    %c0_9 = arith.constant 0 : index
    %c0_10 = arith.constant 0 : index
    %19 = vector.load %arg5[%c0_9, %c0_10] : memref<1x2xf32, #tpu.memory_space<vmem>>, vector<1x2xf32>
    %20 = vector.broadcast %19 : vector<1x2xf32> to vector<8x2xf32>
    %21 = arith.addf %18, %20 : vector<8x2xf32>
    %c0_11 = arith.constant 0 : index
    %c0_12 = arith.constant 0 : index
    %22 = vector.load %arg6[%c0_11, %c0_12] : memref<8x2xf32, #tpu.memory_space<vmem>>, vector<8x2xf32>
    tpu.vector_store %arg6[%c0_11, %c0_12], %21 {strides = array<i32>} : memref<8x2xf32, #tpu.memory_space<vmem>>, vector<8x2xf32>,
    return
  }
  func.func @transform_0(%arg0: i32) -> (i32, i32) {
    %c0_i32 = arith.constant 0 : i32
    %c0_i32_0 = arith.constant 0 : i32
    return %arg0, %c0_i32 : i32, i32
  }
  func.func @transform_1(%arg0: i32) -> (i32, i32) {
    %c0_i32 = arith.constant 0 : i32
    %c0_i32_0 = arith.constant 0 : i32
    %c0_i32_1 = arith.constant 0 : i32
    return %c0_i32, %c0_i32_0 : i32, i32
  }
  func.func @transform_2(%arg0: i32) -> (i32, i32) {
    %c0_i32 = arith.constant 0 : i32
    %c0_i32_0 = arith.constant 0 : i32
    %c0_i32_1 = arith.constant 0 : i32
    return %c0_i32, %c0_i32_0 : i32, i32
  }
  func.func @transform_3(%arg0: i32) -> (i32, i32) {
    %c0_i32 = arith.constant 0 : i32
    %c0_i32_0 = arith.constant 0 : i32
    %c0_i32_1 = arith.constant 0 : i32
    return %c0_i32, %c0_i32_0 : i32, i32
  }
  func.func @transform_4(%arg0: i32) -> (i32, i32) {
    %c0_i32 = arith.constant 0 : i32
    %c0_i32_0 = arith.constant 0 : i32
    %c0_i32_1 = arith.constant 0 : i32
    return %c0_i32, %c0_i32_0 : i32, i32
  }
  func.func @transform_5(%arg0: i32) -> (i32, i32) {
    %c0_i32 = arith.constant 0 : i32
    %c0_i32_0 = arith.constant 0 : i32
    return %arg0, %c0_i32 : i32, i32
  }
}

</mosaic_0001>

<bundles_post_ra>
// kernel: net_forward.1
= control target key start
LH: loop header
LB: loop body
LE: loop exit
PB: predicated region body
PF: predicated region fallthrough
CT: control target
= control target key end

     0   :  { %s521_s18 = smov 0   ;;  %s605_s0 = inlined_call_operand.vmem [shape: f32[16,2], index: 0, kind: input, shape index: {}]   ;;  %s606_s1 = inlined_call_operand.vmem [shape: f32[2,128], index: 1, kind: input, shape index: {}]   ;;  %s607_s2 = inlined_call_operand.vmem [shape: f32[1,128], index: 2, kind: input, shape index: {}]   ;;  %s608_s3 = inlined_call_operand.vmem [shape: f32[128,2], index: 3, kind: input, shape index: {}]   ;;  %s609_s4 = inlined_call_operand.vmem [shape: f32[1,2], index: 4, kind: input, shape index: {}]   ;;  %s610_s5 = inlined_call_operand.vmem [shape: f32[16,2], index: 5, kind: output, shape index: {}]  }
   0x1 LB: > { %s400_s19 = sadd.s32 4294967295, %s485_s18   ;;  %p404_p0 = scmp.ge.s32.totalorder %s485_s18, 1  ;;  %s485_s18 = sphi %s521_s18, %s15_s18  }
   0x2   : > { %p186_p1 = scmp.lt.s32.totalorder %s485_s18, 3 }
   0x4   : > { %p187_p2 = pnand %p404_p0, %p186_p1 }
   0x5   : > { %p212_p3 = scmp.lt.s32.totalorder (!%p187_p2), %s400_s19, 1 }
   0x6   : > { %190 = sbr.rel (%p187_p2) target bundleno = 348 (0x15c), region = 40 }
   0xb   : > { %v267_v0 = vld [vmem:[%s608_s3 + $0x78] sm:$0xff]  ;;  %v487_v1 = vmov 0   ;;  %v488_v2 = vmov 0.0   ;;  %v266_v3 = vld [vmem:[%s608_s3 + $0x70] sm:$0xff]  ;;  %s612_s19 = smov (!%p212_p3, %s400_s19), 1  ;;  %v265_v4 = vld [vmem:[%s608_s3 + $0x68] sm:$0xff] }
   0xc   : > { %477 = vset.pattern.permute.xlu0 %v487_v1  ;;  %430 = vmatprep.subr.mxu0 %v488_v2  ;;  %s405_s26 = sshll.u32 %s612_s19, 3  ;;  %v264_v5 = vld [vmem:[%s608_s3 + $0x60] sm:$0xff]  ;;  %v263_v7 = vld [vmem:[%s608_s3 + $0x58] sm:$0xff]  ;;  %v262_v8 = vld [vmem:[%s608_s3 + $0x50] sm:$0xff]  ;;  %v489_v9 = vmov 1   ;;  %vm490_vm0 = vmmov 0  }
   0xd   : > { %431 = vmatpush3.msra.mxu0 %v267_v0  ;;  %s215_s29 = scalar_lea.vmem %s605_s0, %s405_s26  ;;  %v261_v10 = vld [vmem:[%s608_s3 + $0x48] sm:$0xff]  ;;  %v260_v11 = vld [vmem:[%s608_s3 + $0x40] sm:$0xff]  ;;  %462 = vmatprep.mubr.msk.f32.mxu0 %vm490_vm0, %v488_v2  ;;  %v259_v12 = vld [vmem:[%s608_s3 + $0x38] sm:$0xff]  ;;  %s219_s21 = scalar_lea.vmem %s610_s5, %s405_s26  ;;  %vm345_vm1 = vcmask 15360  }
   0xe   : > { %432 = vmatprep.subr.mxu0 %v488_v2  ;;  %v220_v6 = vld [vmem:[%s215_s29] sm:$0xff]  ;;  %v258_v13 = vld [vmem:[%s608_s3 + $0x30] sm:$0xff]  ;;  %v257_v14 = vld [vmem:[%s608_s3 + $0x28] sm:$0xff] }
   0xf   : > { %433 = vmatpush3.msra.mxu0 %v266_v3  ;;  %224 = vperm.xlu0 %477, %v220_v6   ;;  %v256_v15 = vld [vmem:[%s608_s3 + $0x20] sm:$0xff]  ;;  %v255_v16 = vld [vmem:[%s608_s3 + $0x18] sm:$0xff]  ;;  %v254_v17 = vld [vmem:[%s608_s3 + $0x10] sm:$0xff] }
  0x10   : > { %434 = vmatprep.subr.mxu0 %v488_v2  ;;  %v253_v18 = vld [vmem:[%s608_s3 + $0x8] sm:$0xff]  ;;  %v252_v19 = vld [vmem:[%s608_s3] sm:$0xff] }
  0x11   : > { %435 = vmatpush3.msra.mxu0 %v265_v4  ;;  %v407_v21 = vld [vmem:[%s606_s1] ss:$0 sm:$0xff]  ;;  %v408_v22 = vld [vmem:[%s606_s1 + $0x1] ss:$0 sm:$0xff] }
  0x12   : > { %436 = vmatprep.subr.mxu0 %v488_v2  ;;  %v409_v26 = vld [vmem:[%s607_s2] ss:$0 sm:$0xff] }
  0x13   : > { %437 = vmatpush3.msra.mxu0 %v264_v5  ;;  %478 = vset.pattern.permute.xlu0 %v489_v9  ;;  %v410_v30 = vld [vmem:[%s609_s4] ss:$0 sm:$0xff] }
  0x14   : > { %438 = vmatprep.subr.mxu0 %v488_v2  ;;  %234 = vperm.xlu0 %478, %v220_v6  }
  0x15   : > { %439 = vmatpush3.msra.mxu0 %v263_v7 }
  0x16   : > { %440 = vmatprep.subr.mxu0 %v488_v2 }
  0x17   : > { %441 = vmatpush3.msra.mxu0 %v262_v8 }
  0x18   : > { %442 = vmatprep.subr.mxu0 %v488_v2 }
  0x19   : > { %443 = vmatpush3.msra.mxu0 %v261_v10 }
  0x1a   : > { %444 = vmatprep.subr.mxu0 %v488_v2 }
  0x1b   : > { %445 = vmatpush3.msra.mxu0 %v260_v11 }
  0x1c   : > { %446 = vmatprep.subr.mxu0 %v488_v2 }
  0x1d   : > { %447 = vmatpush3.msra.mxu0 %v259_v12 }
  0x1e   : > { %448 = vmatprep.subr.mxu0 %v488_v2 }
  0x1f   : > { %449 = vmatpush3.msra.mxu0 %v258_v13 }
  0x20   : > { %450 = vmatprep.subr.mxu0 %v488_v2 }
  0x21   : > { %451 = vmatpush3.msra.mxu0 %v257_v14 }
  0x22   : > { %452 = vmatprep.subr.mxu0 %v488_v2 }
  0x23   : > { %453 = vmatpush3.msra.mxu0 %v256_v15 }
  0x24   : > { %454 = vmatprep.subr.mxu0 %v488_v2 }
  0x25   : > { %455 = vmatpush3.msra.mxu0 %v255_v16 }
  0x26   : > { %456 = vmatprep.subr.mxu0 %v488_v2 }
  0x27   : > { %457 = vmatpush3.msra.mxu0 %v254_v17 }
  0x28   : > { %458 = vmatprep.subr.mxu0 %v488_v2 }
  0x29   : > { %459 = vmatpush3.msra.mxu0 %v253_v18 }
  0x2a   : > { %460 = vmatprep.subr.mxu0 %v488_v2 }
  0x2b   : > { %461 = vmatpush3.msra.mxu0 %v252_v19 }
  0x8a   : > { %v225_v20 = vpop.permute.xlu0 %224 }
  0x8b   : > { %v231_v24 = vmul.f32 %v407_v21, %v225_v20 }
  0x8f   : > { %v235_v23 = vpop.permute.xlu0 %234 }
  0x90   : > { %v241_v25 = vmul.f32 %v408_v22, %v235_v23 }
  0x92   : > { %v242_v27 = vadd.f32 %v241_v25, %v231_v24 }
  0x94   : > { %v250_v28 = vadd.f32 %v409_v26, %v242_v27 }
  0x96   : > { %v251_v29 = vmax.f32 %v250_v28, 0.0 }
  0x98   : > { %463 = vmatmul.mubr.f32.vlgmr.msra.gmra.mxu0 %v251_v29 }
 0x158   : > { %v341_v31 = vpop.f32.mrf.mxu0 }
 0x159   : > { %v342_v32 = vadd.f32 %v410_v30, %v341_v31 }
 0x15a   : > { %v464_v33 = vpop.f32.mrf.mxu0 }
 0x15b   : > { %346 = vst.msk [vmem:[%s219_s21] sm:$0xff] %vm345_vm1, %v342_v32 }
 0x15c PF: > { %s15_s18 = sadd.s32 1, %s485_s18  }
 0x15d   : > { %p12_p4 = scmp.ge.s32.totalorder %s15_s18, 4  }
 0x15f   :  { %14 = sbr.rel (!%p12_p4) target bundleno = 1 (0x1), region = 70 }

</bundles_post_ra>
